<compile_context>
chip_gen: v6e
topology: v6e:2x2x1
jax: 0.10.0
libtpu: 0.0.40
codegen_flags: <defaults>
</compile_context>

<pallas_src>
import functools

import jax
import jax.numpy as jnp
from jax.experimental import pallas as pl
from jax.experimental.pallas import tpu as pltpu

_LANE = 128     # lane width: last block dim should be a multiple of this
_SUBLANE = 8    # sublane quantum for the second-to-last dim


def _physical_vmem_bytes():
    try:
        return int(pltpu.get_tpu_info().vmem_capacity_bytes)
    except Exception:
        return 64 * 1024 * 1024   # conservative: v7x per-TensorCore VMEM


def _round_down(x, m):
    return (x // m) * m


def _round_up(x, m):
    return pl.cdiv(x, m) * m


# --------------------------------------------------------------------------
# Main path: full dim-0 reduction inside one (N, tile_d) column block.
# --------------------------------------------------------------------------
def _softmax_cols_kernel(x_ref, o_ref):
    x = x_ref[...].astype(jnp.float32)
    c = jnp.max(x, axis=0, keepdims=True)                    # (1, tile_d)
    num = jnp.exp(x - c)                                     # (N, tile_d)
    denom = jnp.sum(num, axis=0, keepdims=True)              # (1, tile_d)
    # One reciprocal per column + broadcast multiply instead of N*D divides.
    o_ref[...] = (num * (1.0 / denom)).astype(o_ref.dtype)


# --------------------------------------------------------------------------
# Large-N fallback, pass 1: online (running max / sum) reduction over row
# blocks.  Grid = (col_tiles, row_tiles); the row axis is the reduction axis
# (last, "arbitrary"); m/s outputs are accumulators resident across it.
# --------------------------------------------------------------------------
def _stats_kernel(x_ref, m_ref, s_ref, *, n_rows, tile_n):
    i = pl.program_id(1)                                     # row-block index
    x = x_ref[...].astype(jnp.float32)
    row = jax.lax.broadcasted_iota(jnp.int32, x.shape, 0) + i * tile_n
    x = jnp.where(row < n_rows, x, -jnp.inf)                 # mask ragged rows

    @pl.when(i == 0)
    def _():
        m_ref[...] = jnp.full_like(m_ref, -jnp.inf)
        s_ref[...] = jnp.zeros_like(s_ref)

    m_prev = m_ref[...]
    m_new = jnp.maximum(m_prev, jnp.max(x, axis=0, keepdims=True))
    s_ref[...] = (s_ref[...] * jnp.exp(m_prev - m_new)
                  + jnp.sum(jnp.exp(x - m_new), axis=0, keepdims=True))
    m_ref[...] = m_new


# --------------------------------------------------------------------------
# Large-N fallback, pass 2: elementwise normalize with the per-column stats.
# --------------------------------------------------------------------------
def _normalize_kernel(x_ref, m_ref, s_ref, o_ref):
    x = x_ref[...].astype(jnp.float32)
    o_ref[...] = (jnp.exp(x - m_ref[...]) * (1.0 / s_ref[...])).astype(o_ref.dtype)


def _softmax_dim0_2d(x, tile_d, vmem_budget_bytes):
    N, D = x.shape
    itemsize = jnp.dtype(x.dtype).itemsize

    phys_vmem = _physical_vmem_bytes()
    if vmem_budget_bytes is None:
        # Half of per-core physical VMEM for the pipelined blocks:
        # ~32 MiB on v7x (64 MiB/TC), ~64 MiB on v5e/v6e (128 MiB).
        vmem_budget_bytes = phys_vmem // 2
    vmem_limit_bytes = int(min(phys_vmem - (4 << 20),
                               max(phys_vmem * 3 // 4,
                                   vmem_budget_bytes + (8 << 20))))

    # VMEM bytes per element of a block: 2x double-buffered input at itemsize
    # + 2x double-buffered output at itemsize + ~2 single-buffered f32 temps
    # (the f32 copy of x and the numerator) that Mosaic materializes.
    per_elem = 4 * itemsize + 8
    d_128 = _round_up(D, _LANE)

    # ---------------- main path: whole column (dim 0) in one block ----------
    max_tile = _round_down(vmem_budget_bytes // (N * per_elem), _LANE)
    if max_tile >= _LANE:
        if tile_d is None:
            tile_d = max_tile                        # biggest block that fits
        tile_d = max(_LANE, min(_round_down(tile_d, _LANE), d_128, max_tile))
        # v7x megacore: ensure the "parallel" axis has >= 2 steps so both
        # TensorCores get work (a single extra step is noise on v5e/v6e).
        if d_128 >= 2 * _LANE:
            tile_d = min(tile_d, _round_up(pl.cdiv(d_128, 2), _LANE))
        if D < _LANE:
            tile_d = D                               # single full-width block

        return pl.pallas_call(
            _softmax_cols_kernel,
            out_shape=jax.ShapeDtypeStruct((N, D), x.dtype),
            grid_spec=pl.GridSpec(
                grid=(pl.cdiv(D, tile_d),),
                in_specs=[pl.BlockSpec((N, tile_d), lambda j: (0, j))],
                out_specs=pl.BlockSpec((N, tile_d), lambda j: (0, j)),
            ),
            compiler_params=pltpu.CompilerParams(
                dimension_semantics=("parallel",),
                vmem_limit_bytes=vmem_limit_bytes,
            ),
            cost_estimate=pl.CostEstimate(
                flops=5 * N * D,
                transcendentals=N * D,
                bytes_accessed=2 * N * D * itemsize,
            ),
        )(x)

    # ---------------- fallback: online softmax over row blocks --------------
    # N is too large for an (N, 128) double-buffered block under the budget.
    tile_d2 = min(4 * _LANE, d_128)
    if tile_d2 >= D:
        tile_d2 = D                                  # single full-width block
    max_rows = max(_round_down(vmem_budget_bytes // (per_elem * tile_d2),
                               _SUBLANE), _SUBLANE)
    tile_n = N if N <= max_rows else max_rows
    grid_cols = pl.cdiv(D, tile_d2)
    grid_rows = pl.cdiv(N, tile_n)

    m, s = pl.pallas_call(
        functools.partial(_stats_kernel, n_rows=N, tile_n=tile_n),
        out_shape=(jax.ShapeDtypeStruct((1, D), jnp.float32),
                   jax.ShapeDtypeStruct((1, D), jnp.float32)),
        grid_spec=pl.GridSpec(
            grid=(grid_cols, grid_rows),             # reduction axis last
            in_specs=[pl.BlockSpec((tile_n, tile_d2), lambda j, i: (i, j))],
            out_specs=(pl.BlockSpec((1, tile_d2), lambda j, i: (0, j)),
                       pl.BlockSpec((1, tile_d2), lambda j, i: (0, j))),
        ),
        compiler_params=pltpu.CompilerParams(
            dimension_semantics=("parallel", "arbitrary"),
            vmem_limit_bytes=vmem_limit_bytes,
        ),
        cost_estimate=pl.CostEstimate(
            flops=6 * N * D,
            transcendentals=2 * N * D,
            bytes_accessed=N * D * itemsize + 2 * D * 4,
        ),
    )(x)

    return pl.pallas_call(
        _normalize_kernel,
        out_shape=jax.ShapeDtypeStruct((N, D), x.dtype),
        grid_spec=pl.GridSpec(
            grid=(grid_cols, grid_rows),
            in_specs=[pl.BlockSpec((tile_n, tile_d2), lambda j, i: (i, j)),
                      pl.BlockSpec((1, tile_d2), lambda j, i: (0, j)),
                      pl.BlockSpec((1, tile_d2), lambda j, i: (0, j))],
            out_specs=pl.BlockSpec((tile_n, tile_d2), lambda j, i: (i, j)),
        ),
        compiler_params=pltpu.CompilerParams(
            dimension_semantics=("parallel", "parallel"),
            vmem_limit_bytes=vmem_limit_bytes,
        ),
        cost_estimate=pl.CostEstimate(
            flops=3 * N * D,
            transcendentals=N * D,
            bytes_accessed=2 * N * D * itemsize + 2 * D * 4,
        ),
    )(x, m, s)


def my_softmax_stable(x, tile_d=None, vmem_budget_bytes=None):
    """Numerically stable softmax over axis 0 (same semantics as the torch module)."""
    assert x.ndim >= 1, "expected at least a 1-D input"
    orig_shape = x.shape
    x2 = x if x.ndim == 2 else x.reshape(orig_shape[0], -1)
    out = _softmax_dim0_2d(x2, tile_d, vmem_budget_bytes)
    return out if x.ndim == 2 else out.reshape(orig_shape)


if __name__ == "__main__":
    def ref_softmax_dim0(x):
        c = jnp.max(x, axis=0, keepdims=True)
        num = jnp.exp(x - c)
        return num / jnp.sum(num, axis=0, keepdims=True)

    key = jax.random.PRNGKey(0)
    k1, k2, k3 = jax.random.split(key, 3)

    # small shape consistent with the module: seq=8, hidden=32 (single block).
    x1 = jax.random.normal(k1, (8, 32), dtype=jnp.float32)
    out1 = jax.block_until_ready(my_softmax_stable(x1))
    assert out1.shape == x1.shape and out1.dtype == x1.dtype
    assert jnp.allclose(out1, ref_softmax_dim0(x1), atol=1e-6, rtol=1e-6)
    assert jnp.allclose(jnp.sum(out1, axis=0), jnp.ones((x1.shape[1],)), atol=1e-5)

    # unaligned D = 320: multi-step grid with an in-kernel masked boundary
    # block (no wrapper-side pad / slice HBM passes).
    x2 = jax.random.normal(k2, (8, 320), dtype=jnp.float32)
    out2 = jax.block_until_ready(my_softmax_stable(x2))
    assert out2.shape == x2.shape
    assert jnp.allclose(out2, ref_softmax_dim0(x2), atol=1e-6, rtol=1e-6)

    # tiny budget forces the large-N online-softmax fallback (row-blocked
    # reduction with ragged row and column boundary blocks).
    x3 = jax.random.normal(k3, (44, 320), dtype=jnp.float32)
    out3 = jax.block_until_ready(my_softmax_stable(x3, vmem_budget_bytes=64 * 1024))
    assert out3.shape == x3.shape
    assert jnp.allclose(out3, ref_softmax_dim0(x3), atol=1e-5, rtol=1e-5)
    assert jnp.allclose(jnp.sum(out3, axis=0), jnp.ones((x3.shape[1],)), atol=1e-4)

    print("KERNEL_OK")
</pallas_src>

<mosaic_0001>
module attributes {stable_mosaic.version = 11 : i64} {
  func.func @_softmax_cols_kernel(%arg0: i32, %arg1: memref<8x32xf32, #tpu.memory_space<vmem>>, %arg2: memref<8x32xf32, #tpu.memory_space<vmem>>) attributes {dimension_semantics = [#tpu.dimension_semantics<parallel>], iteration_bounds = array<i64: 1>, scalar_prefetch = 0 : i64, scratch_operands = 0 : i64, tpu.core_type = #tpu.core_type<tc>, window_params = [{transform_indices = @transform_0, window_bounds = array<i64: 8, 32>}, {transform_indices = @transform_1, window_bounds = array<i64: 8, 32>}]} {
    %c0 = arith.constant 0 : index
    %c0_0 = arith.constant 0 : index
    %0 = vector.load %arg1[%c0, %c0_0] : memref<8x32xf32, #tpu.memory_space<vmem>>, vector<8x32xf32>
    %cst = arith.constant dense<0xFF800000> : vector<32xf32>
    %1 = vector.multi_reduction <maximumf>, %0, %cst [0] : vector<8x32xf32> to vector<32xf32>
    %2 = vector.shape_cast %1 : vector<32xf32> to vector<1x32xf32>
    %3 = vector.broadcast %2 : vector<1x32xf32> to vector<8x32xf32>
    %4 = arith.subf %0, %3 : vector<8x32xf32>
    %5 = math.exp %4 : vector<8x32xf32>
    %cst_1 = arith.constant dense<0.000000e+00> : vector<32xf32>
    %6 = vector.multi_reduction <add>, %5, %cst_1 [0] : vector<8x32xf32> to vector<32xf32>
    %7 = vector.shape_cast %6 : vector<32xf32> to vector<1x32xf32>
    %cst_2 = arith.constant 1.000000e+00 : f32
    %8 = vector.broadcast %cst_2 : f32 to vector<1x32xf32>
    %9 = arith.divf %8, %7 : vector<1x32xf32>
    %10 = vector.broadcast %9 : vector<1x32xf32> to vector<8x32xf32>
    %11 = arith.mulf %5, %10 : vector<8x32xf32>
    %c0_3 = arith.constant 0 : index
    %c0_4 = arith.constant 0 : index
    %12 = vector.load %arg2[%c0_3, %c0_4] : memref<8x32xf32, #tpu.memory_space<vmem>>, vector<8x32xf32>
    tpu.vector_store %arg2[%c0_3, %c0_4], %11 {strides = array<i32>} : memref<8x32xf32, #tpu.memory_space<vmem>>, vector<8x32xf32>,
    return
  }
  func.func @transform_0(%arg0: i32) -> (i32, i32) {
    %c0_i32 = arith.constant 0 : i32
    %c0_i32_0 = arith.constant 0 : i32
    return %c0_i32, %arg0 : i32, i32
  }
  func.func @transform_1(%arg0: i32) -> (i32, i32) {
    %c0_i32 = arith.constant 0 : i32
    %c0_i32_0 = arith.constant 0 : i32
    return %c0_i32, %arg0 : i32, i32
  }
}

</mosaic_0001>

<bundles_post_ra>
// kernel: tpu_custom_call.1
= control target key start
LH: loop header
LB: loop body
LE: loop exit
PB: predicated region body
PF: predicated region fallthrough
CT: control target
= control target key end

     0   :  { %6 = vsyncpa [#allocation3], 0  ;;  %s130_s0 = inlined_call_operand.hbm [shape: f32[8,32], index: 0, kind: input, shape index: {}]   ;;  %s131_s1 = inlined_call_operand.hbm [shape: f32[8,32], index: 1, kind: output, shape index: {}]  }
   0x1   :  { %7 = vsyncpa [#allocation4], 0  ;;  %s109_s6 = smov [#allocation2]  }
   0x2   :  { %s14_s7 = sshll.u32 %s109_s6, 4  ;;  %s15_s7 = int_to_ptr.vmem [resolvable:$true] %s14_s7 }
   0x3   :  { %s73_s8 = scalar_lea.vmem %s15_s7, 128  ;;  %p78_p1 = scmp.lt.s32.totalorder %s15_s7, %s15_s7 }
   0x4   :  { %p74_p0 = scmp.ne.s32.totalorder %s15_s7, %s73_s8  ;;  %p79_p2 = scmp.lt.s32.totalorder %s73_s8, %s73_s8 }
   0x6   :  { %p80_p3 = por %p79_p2, %p78_p1 }
   0x8   :  { %p81_p4 = pnand %p80_p3, %p74_p0 }
   0xa   :  { %84 = shalt.err (!%p81_p4)
}
   0xb   :  { %17 = dma.hbm_to_vmem [thread:$0]  %s130_s0, 128, %s15_s7, [#allocation3]  }
   0xc   :  { %105 = dma.done.wait [#allocation3], 128  }
   0xd   :  { %106 = vsyncadd [#allocation3], 4294967168  ;;  %vm22_vm0 = vcmask 261120   ;;  %v21_v0 = vld [vmem:[#allocation2] sm:$0xff]  ;;  %s110_s0 = smov [#allocation5]  }
   0xe   :  { %v23_v1 = vsel %vm22_vm0, %v21_v0, -inf  ;;  %s50_s11 = sshll.u32 %s110_s0, 4  ;;  %s51_s11 = int_to_ptr.vmem [resolvable:$true] %s50_s11 }
   0xf   :  { %v24_v2 = vrot.slane %v23_v1, 4  ;;  %s85_s12 = scalar_lea.vmem %s51_s11, 128  ;;  %p90_p6 = scmp.lt.s32.totalorder %s51_s11, %s51_s11 }
  0x10   :  { %p86_p5 = scmp.ne.s32.totalorder %s51_s11, %s85_s12  ;;  %p91_p7 = scmp.lt.s32.totalorder %s85_s12, %s85_s12 }
  0x11   :  { %v25_v3 = vmax.f32 %v23_v1, %v24_v2 }
  0x12   :  { %p92_p8 = por %p91_p7, %p90_p6 }
  0x13   :  { %v26_v4 = vrot.slane %v25_v3, 2 }
  0x14   :  { %p93_p9 = pnand %p92_p8, %p86_p5 }
  0x15   :  { %v27_v5 = vmax.f32 %v25_v3, %v26_v4 }
  0x17   :  { %v28_v6 = vrot.slane %v27_v5, 1 }
  0x19   :  { %v29_v7 = vmax.f32 %v27_v5, %v28_v6 }
  0x1b   :  { %v30_v8 = vsub.f32 %v21_v0, %v29_v7 }
  0x1d   :  { %v31_v9 = vmul.f32 1.442695, %v30_v8 }
  0x1f   :  { %61 = vpow2.f32 %v31_v9 }
  0x2c   :  { %v62_v10 = vpop.eup %61 }
  0x2d   :  { %v33_v11 = vsel %vm22_vm0, %v62_v10, 0.0 }
  0x2e   :  { %v34_v12 = vrot.slane %v33_v11, 4 }
  0x30   :  { %v35_v13 = vadd.f32 %v34_v12, %v33_v11 }
  0x32   :  { %v36_v14 = vrot.slane %v35_v13, 2 }
  0x34   :  { %v37_v15 = vadd.f32 %v36_v14, %v35_v13 }
  0x36   :  { %v38_v16 = vrot.slane %v37_v15, 1 }
  0x38   :  { %v39_v17 = vadd.f32 %v38_v16, %v37_v15 }
  0x3a   :  { %63 = vrcp.f32 %v39_v17 }
  0x47   :  { %v64_v18 = vpop.eup %63 }
  0x48   :  { %v42_v19 = vmul.f32 %v64_v18, %v62_v10 }
  0x4a   :  { %43 = vst.msk [vmem:[#allocation5] sm:$0xff] %vm22_vm0, %v42_v19 }
  0x4b   :  { %96 = shalt.err (!%p93_p9)
}
  0x4c   :  { %53 = dma.vmem_to_hbm [thread:$0]  %s51_s11, 128, %s131_s1, [#allocation4]  }
  0x4d   :  { %107 = dma.done.wait [#allocation4], 128  }
  0x4e   :  { %108 = vsyncadd [#allocation4], 4294967168 }
  0x4f   :  { %57 = vsyncpa [#allocation3], 1 }
  0x50   :  { %58 = vsyncpa [#allocation4], 1 }

</bundles_post_ra>
